<compile_context>
chip_gen: v7x
topology: tpu7x:2x2x1
jax: 0.10.0
libtpu: 0.0.40
codegen_flags: <defaults>
</compile_context>

<pallas_src>
import functools
import math

import jax
import jax.numpy as jnp
from jax.experimental import pallas as pl
from jax.experimental.pallas import tpu as pltpu


def _round_up(x, m):
    return ((x + m - 1) // m) * m


@functools.lru_cache(maxsize=1)
def _vmem_capacity_bytes():
    """Physical VMEM of the current generation; conservative fallback = 64 MiB (v7x)."""
    try:
        return int(pltpu.get_tpu_info().vmem_capacity_bytes)
    except Exception:
        return 64 << 20


def _glu_kernel(x_ref, w1_ref, w2_ref, o_ref):
    # x_ref: (tm, D)   w1_ref/w2_ref: (D, tn)   o_ref: (tm, tn)
    x = x_ref[...]
    # Two independent MXU matmuls with f32 accumulation. Keeping them separate
    # (instead of one fused dot sliced afterwards) keeps the live f32 intermediate
    # at tm*tn and lets the gate's sigmoid/multiply overlap the second matmul.
    gate = jnp.dot(x, w1_ref[...], preferred_element_type=jnp.float32)   # proj1(x)
    val = jnp.dot(x, w2_ref[...], preferred_element_type=jnp.float32)    # proj2(x)
    o_ref[...] = (jax.nn.sigmoid(gate) * val).astype(o_ref.dtype)


@functools.partial(jax.jit, static_argnames=("tm", "tn"))
def glu_pallas(x, w1_t, w2_t, *, tm=256, tn=None):
    """GLU forward.

    x    : (B, T, D) activations.
    w1_t : (D, D) = proj1.weight.T  (kernel computes x @ W1^T).
    w2_t : (D, D) = proj2.weight.T.
    tm   : row tile (rows of B*T per inner grid step).
    tn   : output-column tile; None -> auto (largest lane-aligned tile whose VMEM
           working set fits ~80% of the generation's physical VMEM).

    Pass bf16 operands on every generation (v5e's MXU is bf16-native as well);
    accumulation and the sigmoid epilogue run in f32 inside the kernel.
    """
    B, T, D = x.shape
    M = B * T
    out_dtype = x.dtype
    compute_dtype = x.dtype
    bpe = jnp.dtype(compute_dtype).itemsize
    out_bpe = jnp.dtype(out_dtype).itemsize

    x2 = x.reshape(M, D).astype(compute_dtype)
    w1_t = w1_t.astype(compute_dtype)
    w2_t = w2_t.astype(compute_dtype)

    # Row tile: multiple of the dtype's sublane packing (8 f32 / 16 bf16 / 32 int8),
    # clamped for small inputs; rows padded instead of asserting divisibility.
    packing = 8 * max(1, 4 // bpe)
    tm_eff = max(packing, min(_round_up(tm, packing), _round_up(M, packing)))
    m_pad = _round_up(M, tm_eff)
    if m_pad != M:
        x2 = jnp.pad(x2, ((0, m_pad - M), (0, 0)))
    num_m = m_pad // tm_eff

    # Generation-aware VMEM budget (leave headroom for Mosaic internal scratch).
    vmem_cap = _vmem_capacity_bytes()
    budget = int(vmem_cap * 0.8)

    def footprint(tn_, w_bufs):
        return (2 * tm_eff * D * bpe            # x tile (double-buffered)
                + w_bufs * 2 * D * tn_ * bpe    # W1^T + W2^T column blocks
                + 2 * tm_eff * tn_ * out_bpe    # out tile (double-buffered)
                + 2 * tm_eff * tn_ * 4)         # two f32 matmul intermediates

    if tn is None:
        tn = D
        # Shrink tn (keeping 128-lane alignment) until the working set fits.
        while (footprint(tn, 1 if tn == D else 2) > budget
               and tn % 2 == 0 and tn // 2 >= 128 and (tn // 2) % 128 == 0):
            tn //= 2
    assert D % tn == 0, "tn must divide d_model"
    assert tn == D or tn % 128 == 0, \
        "partial column tiles must be lane-aligned (tn % 128 == 0)"
    num_n = D // tn

    w_bufs = 1 if num_n == 1 else 2
    vmem_limit = min(max(int(footprint(tn, w_bufs) * 1.2) + (4 << 20), 32 << 20), budget)

    # Resident weights (block index never changes) -> single-buffer them so the
    # default double-buffer doesn't reserve 2x the weight slab (matters on v7x).
    w_kwargs = dict(pipeline_mode=pl.Buffered(1)) if num_n == 1 else {}

    cost = pl.CostEstimate(
        flops=4 * m_pad * D * D,                 # two (M, D) x (D, D) matmuls
        transcendentals=m_pad * D,               # sigmoid
        bytes_accessed=(num_n * m_pad * D * bpe  # x streamed once per column block
                        + 2 * D * D * bpe        # both weights read once
                        + m_pad * D * out_bpe),  # output written once
    )

    # Grid: column blocks OUTER, row blocks INNER -> the (D, tn) weight blocks stay
    # resident across all row tiles; only the activation tile streams. Leading
    # (column) axis is also the preferred megacore-sharding axis on v7x.
    out2 = pl.pallas_call(
        _glu_kernel,
        out_shape=jax.ShapeDtypeStruct((m_pad, D), out_dtype),
        grid_spec=pltpu.PrefetchScalarGridSpec(
            num_scalar_prefetch=0,
            grid=(num_n, num_m),
            in_specs=[
                # activation row tile: varies with the inner (row) index only
                pl.BlockSpec((tm_eff, D), lambda j, i: (i, 0)),
                # weight column blocks: constant across the inner row loop
                pl.BlockSpec((D, tn), lambda j, i: (0, j), **w_kwargs),
                pl.BlockSpec((D, tn), lambda j, i: (0, j), **w_kwargs),
            ],
            out_specs=pl.BlockSpec((tm_eff, tn), lambda j, i: (i, j)),
        ),
        compiler_params=pltpu.CompilerParams(
            dimension_semantics=("parallel", "parallel"),
            vmem_limit_bytes=vmem_limit,
        ),
        cost_estimate=cost,
    )(x2, w1_t, w2_t)

    if m_pad != M:
        out2 = out2[:M]
    return out2.reshape(B, T, D)


def glu_reference(x, w1_t, w2_t):
    a = jnp.einsum("btd,de->bte", x, w1_t)
    b = jnp.einsum("btd,de->bte", x, w2_t)
    return jax.nn.sigmoid(a) * b


if __name__ == "__main__":
    key = jax.random.PRNGKey(0)
    kx, k1, k2, kx2, k3, k4 = jax.random.split(key, 6)

    # --- small shape implied by the forward: (batch, seq, d_model) = (2, 8, 32) ---
    B, T, D = 2, 8, 32
    x = jax.random.normal(kx, (B, T, D), dtype=jnp.float32)
    bound = 1.0 / math.sqrt(D)  # nn.Linear default init U(-1/sqrt(fan_in), 1/sqrt(fan_in))
    w1 = jax.random.uniform(k1, (D, D), minval=-bound, maxval=bound, dtype=jnp.float32)
    w2 = jax.random.uniform(k2, (D, D), minval=-bound, maxval=bound, dtype=jnp.float32)
    w1_t, w2_t = w1.T, w2.T  # PyTorch Linear computes x @ W.T

    # f32 path, resident (single-buffered) weights
    out = jax.block_until_ready(glu_pallas(x, w1_t, w2_t))
    ref = glu_reference(x, w1_t, w2_t)
    assert out.shape == (B, T, D)
    assert jnp.allclose(out, ref, atol=1e-5, rtol=1e-5), "f32 mismatch vs reference"

    # bf16 operand path (f32 accumulation inside the kernel)
    xb, w1b, w2b = x.astype(jnp.bfloat16), w1_t.astype(jnp.bfloat16), w2_t.astype(jnp.bfloat16)
    out_bf = jax.block_until_ready(glu_pallas(xb, w1b, w2b))
    ref_bf = glu_reference(xb.astype(jnp.float32), w1b.astype(jnp.float32),
                           w2b.astype(jnp.float32))
    assert out_bf.shape == (B, T, D)
    assert jnp.allclose(out_bf.astype(jnp.float32), ref_bf, atol=3e-2, rtol=3e-2), \
        "bf16 mismatch vs reference"

    # --- column-tiled path (num_n > 1): weight blocks resident across the inner row loop ---
    B2, T2, D2 = 2, 64, 256
    x_big = jax.random.normal(kx2, (B2, T2, D2), dtype=jnp.float32)
    bound2 = 1.0 / math.sqrt(D2)
    w1_big = jax.random.uniform(k3, (D2, D2), minval=-bound2, maxval=bound2, dtype=jnp.float32)
    w2_big = jax.random.uniform(k4, (D2, D2), minval=-bound2, maxval=bound2, dtype=jnp.float32)
    out_big = jax.block_until_ready(glu_pallas(x_big, w1_big.T, w2_big.T, tn=128))
    ref_big = glu_reference(x_big, w1_big.T, w2_big.T)
    assert out_big.shape == (B2, T2, D2)
    assert jnp.allclose(out_big, ref_big, atol=2e-2, rtol=2e-2), "tiled-N mismatch vs reference"

    print("KERNEL_OK")
</pallas_src>

<mosaic_0001>
module attributes {stable_mosaic.version = 11 : i64} {
  func.func @_glu_kernel(%arg0: i32, %arg1: i32, %arg2: memref<16x32xf32, #tpu.memory_space<vmem>>, %arg3: memref<32x32xf32, #tpu.memory_space<vmem>>, %arg4: memref<32x32xf32, #tpu.memory_space<vmem>>, %arg5: memref<16x32xf32, #tpu.memory_space<vmem>>) attributes {dimension_semantics = [#tpu.dimension_semantics<parallel>, #tpu.dimension_semantics<parallel>], iteration_bounds = array<i64: 1, 1>, scalar_prefetch = 0 : i64, scratch_operands = 0 : i64, tpu.core_type = #tpu.core_type<tc>, window_params = [{transform_indices = @transform_0, window_bounds = array<i64: 16, 32>}, {pipeline_mode = #tpu.pipeline_mode<synchronous>, transform_indices = @transform_1, window_bounds = array<i64: 32, 32>}, {pipeline_mode = #tpu.pipeline_mode<synchronous>, transform_indices = @transform_2, window_bounds = array<i64: 32, 32>}, {transform_indices = @transform_3, window_bounds = array<i64: 16, 32>}]} {
    %c0 = arith.constant 0 : index
    %c0_0 = arith.constant 0 : index
    %0 = vector.load %arg2[%c0, %c0_0] : memref<16x32xf32, #tpu.memory_space<vmem>>, vector<16x32xf32>
    %c0_1 = arith.constant 0 : index
    %c0_2 = arith.constant 0 : index
    %1 = vector.load %arg3[%c0_1, %c0_2] : memref<32x32xf32, #tpu.memory_space<vmem>>, vector<32x32xf32>
    %cst = arith.constant dense<0.000000e+00> : vector<16x32xf32>
    %2 = tpu.matmul %0, %1, %cst {dimension_numbers = #tpu.dot_dimension_numbers<[1], [0], [0], [1], [0, 0, 1, 1], [], []>} : vector<16x32xf32>, vector<32x32xf32>, vector<16x32xf32> -> vector<16x32xf32>
    %c0_3 = arith.constant 0 : index
    %c0_4 = arith.constant 0 : index
    %3 = vector.load %arg4[%c0_3, %c0_4] : memref<32x32xf32, #tpu.memory_space<vmem>>, vector<32x32xf32>
    %cst_5 = arith.constant dense<0.000000e+00> : vector<16x32xf32>
    %4 = tpu.matmul %0, %3, %cst_5 {dimension_numbers = #tpu.dot_dimension_numbers<[1], [0], [0], [1], [0, 0, 1, 1], [], []>} : vector<16x32xf32>, vector<32x32xf32>, vector<16x32xf32> -> vector<16x32xf32>
    %5 = arith.negf %2 : vector<16x32xf32>
    %6 = math.exp %5 : vector<16x32xf32>
    %cst_6 = arith.constant 1.000000e+00 : f32
    %7 = vector.broadcast %cst_6 : f32 to vector<16x32xf32>
    %8 = arith.addf %7, %6 : vector<16x32xf32>
    %9 = arith.divf %7, %8 : vector<16x32xf32>
    %10 = arith.mulf %9, %4 : vector<16x32xf32>
    %c0_7 = arith.constant 0 : index
    %c0_8 = arith.constant 0 : index
    %11 = vector.load %arg5[%c0_7, %c0_8] : memref<16x32xf32, #tpu.memory_space<vmem>>, vector<16x32xf32>
    tpu.vector_store %arg5[%c0_7, %c0_8], %10 {strides = array<i32>} : memref<16x32xf32, #tpu.memory_space<vmem>>, vector<16x32xf32>,
    return
  }
  func.func @transform_0(%arg0: i32, %arg1: i32) -> (i32, i32) {
    %c0_i32 = arith.constant 0 : i32
    %c0_i32_0 = arith.constant 0 : i32
    return %arg1, %c0_i32 : i32, i32
  }
  func.func @transform_1(%arg0: i32, %arg1: i32) -> (i32, i32) {
    %c0_i32 = arith.constant 0 : i32
    %c0_i32_0 = arith.constant 0 : i32
    return %c0_i32, %arg0 : i32, i32
  }
  func.func @transform_2(%arg0: i32, %arg1: i32) -> (i32, i32) {
    %c0_i32 = arith.constant 0 : i32
    %c0_i32_0 = arith.constant 0 : i32
    return %c0_i32, %arg0 : i32, i32
  }
  func.func @transform_3(%arg0: i32, %arg1: i32) -> (i32, i32) {
    %c0_i32 = arith.constant 0 : i32
    return %arg1, %arg0 : i32, i32
  }
}

</mosaic_0001>

<bundles_post_ra>
// kernel: glu_pallas.1
= control target key start
LH: loop header
LB: loop body
LE: loop exit
PB: predicated region body
PF: predicated region fallthrough
CT: control target
= control target key end

     0   :  { %8 = vsyncpa [#allocation3], 0  ;;  %s520_s0 = inlined_call_operand.hbm [shape: f32[16,32], index: 0, kind: input, shape index: {}]   ;;  %s521_s1 = inlined_call_operand.hbm [shape: f32[32,32], index: 1, kind: input, shape index: {}]   ;;  %s522_s2 = inlined_call_operand.hbm [shape: f32[32,32], index: 2, kind: input, shape index: {}]   ;;  %s523_s3 = inlined_call_operand.hbm [shape: f32[16,32], index: 3, kind: output, shape index: {}]  }
   0x1   :  { %9 = vsyncpa [#allocation6], 0 }
   0x2   :  { %10 = vsyncpa [#allocation4], 0  ;;  %s421_s12 = smov [#allocation5]   ;;  %s422_s14 = smov [#allocation2]  }
   0x3   :  { %s28_s13 = sshll.u32 %s421_s12, 4  ;;  %s16_s15 = sshll.u32 %s422_s14, 4  ;;  %s29_s13 = int_to_ptr.vmem [resolvable:$true] %s28_s13  ;;  %s447_s15 = int_to_ptr.vmem [resolvable:$true] %s16_s15 }
   0x4   :  { %s327_s18 = scalar_lea.hbm %s521_s1, 512 }
   0x5   :  { %p328_p0 = scmp.ne.s32.totalorder %s521_s1, %s327_s18  ;;  %p331_p1 = scmp.lt.u32.totalorder %s327_s18, %s521_s1 }
   0x7   :  { %p333_p2 = pnand %p331_p1, %p328_p0 }
   0x9   :  { %336 = shalt.err (!%p333_p2)
}
   0xa   :  { %s337_s23 = scalar_lea.vmem %s29_s13, 512  ;;  %p342_p4 = scmp.lt.s32.totalorder %s29_s13, %s29_s13 }
   0xb   :  { %p338_p3 = scmp.ne.s32.totalorder %s29_s13, %s337_s23  ;;  %p343_p5 = scmp.lt.s32.totalorder %s337_s23, %s337_s23 }
   0xd   :  { %p344_p6 = por %p343_p5, %p342_p4 }
   0xf   :  { %p345_p7 = pnand %p344_p6, %p338_p3 }
  0x11   :  { %348 = shalt.err (!%p345_p7)
}
  0x12   :  { %s423_s24 = smov 128   ;;  %s424_s25 = smov 8  }
  0x13   :  { %34 = dma.hbm_to_vmem [thread:$0]  %s521_s1, 512, %s29_s13, [#allocation6], %s423_s24, %s423_s24, %s424_s25  }
  0x14   :  { %s349_s30 = scalar_lea.hbm %s520_s0, 256 }
  0x15   :  { %p350_p8 = scmp.ne.s32.totalorder %s520_s0, %s349_s30  ;;  %p353_p9 = scmp.lt.u32.totalorder %s349_s30, %s520_s0 }
  0x17   :  { %p355_p10 = pnand %p353_p9, %p350_p8 }
  0x19   :  { %358 = shalt.err (!%p355_p10)
}
  0x1a   :  { %s359_s8 = scalar_lea.vmem %s447_s15, 256  ;;  %p364_p12 = scmp.lt.s32.totalorder %s447_s15, %s447_s15 }
  0x1b   :  { %p360_p11 = scmp.ne.s32.totalorder %s447_s15, %s359_s8  ;;  %p365_p13 = scmp.lt.s32.totalorder %s359_s8, %s359_s8 }
  0x1d   :  { %p366_p0 = por %p365_p13, %p364_p12 }
  0x1f   :  { %p367_p1 = pnand %p366_p0, %p360_p11 }
  0x21   :  { %370 = shalt.err (!%p367_p1)
}
  0x22   :  { %22 = dma.hbm_to_vmem [thread:$0]  %s520_s0, 256, %s447_s15, [#allocation3], %s423_s24, %s423_s24, %s424_s25  }
  0x23   :  { %s425_s10 = smov [#allocation7]   ;;  %s371_s14 = scalar_lea.hbm %s522_s2, 512 }
  0x24   :  { %s40_s11 = sshll.u32 %s425_s10, 4  ;;  %p372_p2 = scmp.ne.s32.totalorder %s522_s2, %s371_s14  ;;  %s41_s11 = int_to_ptr.vmem [resolvable:$true] %s40_s11 }
  0x25   :  { %p375_p3 = scmp.lt.u32.totalorder %s371_s14, %s522_s2 }
  0x27   :  { %p377_p4 = pnand %p375_p3, %p372_p2 }
  0x29   :  { %380 = shalt.err (!%p377_p4)
}
  0x2a   :  { %s381_s20 = scalar_lea.vmem %s41_s11, 512  ;;  %p386_p6 = scmp.lt.s32.totalorder %s41_s11, %s41_s11 }
  0x2b   :  { %p382_p5 = scmp.ne.s32.totalorder %s41_s11, %s381_s20  ;;  %p387_p7 = scmp.lt.s32.totalorder %s381_s20, %s381_s20 }
  0x2d   :  { %p388_p8 = por %p387_p7, %p386_p6 }
  0x2f   :  { %p389_p9 = pnand %p388_p8, %p382_p5 }
  0x31   :  { %392 = shalt.err (!%p389_p9)
}
  0x32   :  { %46 = dma.hbm_to_vmem [thread:$0]  %s522_s2, 512, %s41_s11, [#allocation6], %s423_s24, %s423_s24, %s424_s25  }
  0x33   :  { %415 = dma.done.wait [#allocation3], 256  }
  0x34   :  { %416 = vsyncadd [#allocation3], 4294967040 }
  0x35   :  { %417 = dma.done.wait [#allocation6], 1024  }
  0x36   :  { %418 = vsyncadd [#allocation6], 4294966272  ;;  %vm62_vm0 = vcmask 261120   ;;  %v58_v0 = vld [vmem:[#allocation5] sm:$0xff]  ;;  %v59_v1 = vld [vmem:[#allocation5 + $0x8] sm:$0xff]  ;;  %s426_s2 = smov [#allocation8]  }
  0x37   :  { %v60_v2 = vld [vmem:[#allocation5 + $0x10] sm:$0xff]  ;;  %v297_v3 = vpack.c.bf16 %v59_v1, %v58_v0  ;;  %v61_v4 = vld [vmem:[#allocation5 + $0x18] sm:$0xff]  ;;  %v144_v7 = vld [vmem:[#allocation7] sm:$0xff]  ;;  %s244_s21 = sshll.u32 %s426_s2, 4  ;;  %s245_s21 = int_to_ptr.vmem [resolvable:$true] %s244_s21 }
  0x38   :  { %v56_v5 = vld [vmem:[#allocation2] sm:$0xff]  ;;  %v301_v6 = vpack.c.bf16 %v61_v4, %v60_v2  ;;  %v145_v8 = vld [vmem:[#allocation7 + $0x8] sm:$0xff]  ;;  %v147_v11 = vld [vmem:[#allocation7 + $0x18] sm:$0xff]  ;;  %s393_s22 = scalar_lea.vmem %s245_s21, 256  ;;  %p398_p11 = scmp.lt.s32.totalorder %s245_s21, %s245_s21 }
  0x39   :  { %283 = vmatprep.mubr.msk.f32.mxu0 %vm62_vm0, %v56_v5  ;;  %v146_v9 = vld [vmem:[#allocation7 + $0x10] sm:$0xff]  ;;  %294 = vmatprep.mubr.msk.f32.mxu1 %vm62_vm0, %v56_v5  ;;  %v305_v10 = vpack.c.bf16 %v145_v8, %v144_v7  ;;  %v57_v13 = vld [vmem:[#allocation2 + $0x8] sm:$0xff]  ;;  %p394_p10 = scmp.ne.s32.totalorder %s245_s21, %s393_s22  ;;  %p399_p12 = scmp.lt.s32.totalorder %s393_s22, %s393_s22 }
  0x3a   :  { %298 = vmatprep.subr.bf16.mxu0 %v297_v3  ;;  %v309_v12 = vpack.c.bf16 %v147_v11, %v146_v9 }
  0x3b   :  { %300 = vmatpush3.bf16.msra.mxu0 %v297_v3  ;;  %306 = vmatprep.subr.bf16.mxu1 %v305_v10  ;;  %p400_p13 = por %p399_p12, %p398_p11 }
  0x3c   :  { %302 = vmatprep.subr.bf16.mxu0 %v301_v6  ;;  %308 = vmatpush3.bf16.msra.mxu1 %v305_v10 }
  0x3d   :  { %310 = vmatprep.subr.bf16.mxu1 %v309_v12  ;;  %p401_p0 = pnand %p400_p13, %p394_p10 }
  0x3f   :  { %304 = vmatpush3.bf16.msra.mxu0 %v301_v6 }
  0x40   :  { %312 = vmatpush3.bf16.msra.mxu1 %v309_v12 }
  0x42   :  { %284 = vmatmul.mubr.msk.f32.vlgmr.msra.gmra.mrb[0].mxu0 %vm62_vm0, %v57_v13 }
  0x43   :  { %295 = vmatmul.mubr.msk.f32.vlgmr.msra.gmra.mrb[0].mxu1 %vm62_vm0, %v57_v13 }
 0x115   :  { %v285_v14 = vpop.f32.mrb[0].mxu0 }
 0x116   :  { %v262_v15 = vmul.f32 -1.442695, %v285_v14  ;;  %v135_v16 = vpop.f32.mrb[1].mxu0  ;;  %v296_v18 = vpop.f32.mrb[0].mxu1 }
 0x117   :  { %v261_v17 = vmul.f32 -1.442695, %v135_v16  ;;  %v214_v19 = vpop.f32.mrb[1].mxu1 }
 0x118   :  { %319 = vpow2.f32 %v262_v15 }
 0x119   :  { %321 = vpow2.f32 %v261_v17 }
 0x122   :  { %v320_v20 = vpop.eup %319 }
 0x123   :  { %v322_v21 = vpop.eup %321  ;;  %v230_v22 = vadd.f32 1.0, %v320_v20 }
 0x124   :  { %v229_v23 = vadd.f32 1.0, %v322_v21 }
 0x125   :  { %323 = vrcp.f32 %v230_v22 }
 0x126   :  { %325 = vrcp.f32 %v229_v23 }
 0x12f   :  { %v324_v24 = vpop.eup %323 }
 0x130   :  { %v326_v25 = vpop.eup %325  ;;  %v236_v26 = vmul.f32 %v324_v24, %v296_v18 }
 0x131   :  { %v235_v27 = vmul.f32 %v326_v25, %v214_v19 }
 0x132   :  { %238 = vst.msk [vmem:[#allocation8 + $0x8] sm:$0xff] %vm62_vm0, %v236_v26 }
 0x133   :  { %237 = vst.msk [vmem:[#allocation8] sm:$0xff] %vm62_vm0, %v235_v27 }
 0x134   :  { %404 = shalt.err (!%p401_p0)
}
 0x135   :  { %s405_s27 = scalar_lea.hbm %s523_s3, 256 }
 0x136   :  { %p406_p1 = scmp.ne.s32.totalorder %s523_s3, %s405_s27  ;;  %p409_p2 = scmp.lt.u32.totalorder %s405_s27, %s523_s3 }
 0x138   :  { %p411_p3 = pnand %p409_p2, %p406_p1 }
 0x13a   :  { %414 = shalt.err (!%p411_p3)
}
 0x13b   :  { %250 = dma.vmem_to_hbm [thread:$0]  %s245_s21, 256, %s523_s3, [#allocation4], %s423_s24, %s423_s24, %s424_s25  }
 0x13c   :  { %419 = dma.done.wait [#allocation4], 256  }
 0x13d   :  { %420 = vsyncadd [#allocation4], 4294967040 }
 0x13e   :  { %254 = vsyncpa [#allocation3], 1 }
 0x13f   :  { %255 = vsyncpa [#allocation6], 1 }
 0x140   :  { %256 = vsyncpa [#allocation4], 1 }

</bundles_post_ra>
